<compile_context>
chip_gen: v7x
topology: tpu7x:2x2x1
jax: 0.10.0
libtpu: 0.0.40
codegen_flags: <defaults>
</compile_context>

<pallas_src>
import jax
import jax.numpy as jnp
from jax.experimental import pallas as pl
from jax.experimental.pallas import tpu as pltpu


def _round_up(x: int, m: int) -> int:
    return ((x + m - 1) // m) * m


def actor_kernel(x_ref, w1_ref, b1_ref, w2_ref, b2_ref, w3_ref, b3_ref, out_ref):
    # bf16 operands on the MXU, f32 accumulation; biases / activations in f32.
    x = x_ref[...].astype(jnp.bfloat16)                                   # (TM, D)
    h1 = jnp.dot(x, w1_ref[...], preferred_element_type=jnp.float32)      # (TM, F1p)
    h1 = jnp.maximum(h1 + b1_ref[...], 0.0)                               # relu
    h2 = jnp.dot(h1.astype(jnp.bfloat16), w2_ref[...],
                 preferred_element_type=jnp.float32)                      # (TM, F2p)
    h2 = jnp.maximum(h2 + b2_ref[...], 0.0)                               # relu
    a = jnp.dot(h2.astype(jnp.bfloat16), w3_ref[...],
                preferred_element_type=jnp.float32)                       # (TM, Ap)
    out_ref[...] = jnp.tanh(a + b3_ref[...]).astype(out_ref.dtype)        # tanh


def prepare_actor_params(w1, b1, w2, b2, w3, b3):
    """Pad + cast parameters ONCE (hoisted out of the per-step forward).

    Weights are (in, out).  Output/contraction widths (fc1, fc2, n_actions)
    are zero-padded to multiples of 128 lanes and weights cast to bf16 (MXU
    operands).  Biases stay f32 as (1, out_p) rows.  The flattened input dim
    D is NOT padded -- activations are passed unpadded.
    """
    D, F1 = w1.shape
    F2, A = w2.shape[1], w3.shape[1]
    F1p, F2p, Ap = _round_up(F1, 128), _round_up(F2, 128), _round_up(A, 128)
    return dict(
        w1=jnp.pad(w1, ((0, 0), (0, F1p - F1))).astype(jnp.bfloat16),
        b1=jnp.pad(b1.reshape(1, -1), ((0, 0), (0, F1p - F1))).astype(jnp.float32),
        w2=jnp.pad(w2, ((0, F1p - F1), (0, F2p - F2))).astype(jnp.bfloat16),
        b2=jnp.pad(b2.reshape(1, -1), ((0, 0), (0, F2p - F2))).astype(jnp.float32),
        w3=jnp.pad(w3, ((0, F2p - F2), (0, Ap - A))).astype(jnp.bfloat16),
        b3=jnp.pad(b3.reshape(1, -1), ((0, 0), (0, Ap - A))).astype(jnp.float32),
        n_actions=A,
    )


def actor_forward(state, params, *, tm_max=512):
    """state: (B, ...) float32, flattened to (B, D).  Returns (B, n_actions) f32.

    Matches tanh(relu(relu(flatten(state) @ w1 + b1) @ w2 + b2) @ w3 + b3).
    """
    B = state.shape[0]
    x = state.reshape(B, -1)              # nn.Flatten(); stays f32, no lane pad
    D = x.shape[1]
    w1, b1 = params["w1"], params["b1"]
    w2, b2 = params["w2"], params["b2"]
    w3, b3 = params["w3"], params["b3"]
    A = params["n_actions"]
    F1p, F2p, Ap = w1.shape[1], w2.shape[1], w3.shape[1]
    assert w1.shape[0] == D, "flattened input dim must match fc1 weight rows"

    # Batch tiling: minimal padding, bf16-sublane(16)-aligned tiles, and an
    # even tile count when >1 so v7x's two TensorCores get equal work.
    # (On v5e, for very large B a 128-multiple TM aligns with the 128x128 MXU.)
    n_tiles = pl.cdiv(B, tm_max)
    if n_tiles > 1 and n_tiles % 2 == 1:
        n_tiles += 1
    TM = _round_up(pl.cdiv(B, n_tiles), 16)
    B_p = TM * n_tiles
    # Padded batch rows compute relu(b1)-derived garbage; sliced away below.
    xp = jnp.pad(x, ((0, B_p - B), (0, 0))) if B_p != B else x

    const = lambda i: (0, 0)   # weights/biases: VMEM-resident across the grid

    out = pl.pallas_call(
        actor_kernel,
        out_shape=jax.ShapeDtypeStruct((B_p, Ap), jnp.bfloat16),
        grid_spec=pltpu.PrefetchScalarGridSpec(
            num_scalar_prefetch=0,
            grid=(n_tiles,),
            in_specs=[
                # Activations: tiled over the batch, double-buffered by Pallas.
                pl.BlockSpec((TM, D), lambda i: (i, 0)),
                # Weights / biases: constant block index, single-buffered.
                pl.BlockSpec((D, F1p), const, pipeline_mode=pl.Buffered(1)),
                pl.BlockSpec((1, F1p), const, pipeline_mode=pl.Buffered(1)),
                pl.BlockSpec((F1p, F2p), const, pipeline_mode=pl.Buffered(1)),
                pl.BlockSpec((1, F2p), const, pipeline_mode=pl.Buffered(1)),
                pl.BlockSpec((F2p, Ap), const, pipeline_mode=pl.Buffered(1)),
                pl.BlockSpec((1, Ap), const, pipeline_mode=pl.Buffered(1)),
            ],
            out_specs=pl.BlockSpec((TM, Ap), lambda i: (i, 0)),
        ),
        compiler_params=pltpu.CompilerParams(
            dimension_semantics=("parallel",)),
    )(xp, w1, b1, w2, b2, w3, b3)

    return out[:B, :A].astype(jnp.float32)


def init_linear(key, fan_in, fan_out):
    """PyTorch nn.Linear default init: U(-1/sqrt(fan_in), 1/sqrt(fan_in))."""
    kw, kb = jax.random.split(key)
    bound = 1.0 / jnp.sqrt(fan_in)
    w = jax.random.uniform(kw, (fan_in, fan_out), jnp.float32, -bound, bound)
    b = jax.random.uniform(kb, (fan_out,), jnp.float32, -bound, bound)
    return w, b


def ref_forward_bf16(state, w1, b1, w2, b2, w3, b3):
    """Pure-JAX reference with the same bf16-operand / f32-accum recipe."""
    x = state.reshape(state.shape[0], -1).astype(jnp.bfloat16)
    h1 = jnp.maximum(
        jnp.dot(x, w1.astype(jnp.bfloat16),
                preferred_element_type=jnp.float32) + b1, 0.0)
    h2 = jnp.maximum(
        jnp.dot(h1.astype(jnp.bfloat16), w2.astype(jnp.bfloat16),
                preferred_element_type=jnp.float32) + b2, 0.0)
    return jnp.tanh(
        jnp.dot(h2.astype(jnp.bfloat16), w3.astype(jnp.bfloat16),
                preferred_element_type=jnp.float32) + b3)


def ref_forward_f32(state, w1, b1, w2, b2, w3, b3):
    x = state.reshape(state.shape[0], -1)
    h1 = jnp.maximum(x @ w1 + b1, 0.0)
    h2 = jnp.maximum(h1 @ w2 + b2, 0.0)
    return jnp.tanh(h2 @ w3 + b3)


if __name__ == "__main__":
    # Small shapes consistent with the module: input_dims = C*H*W = 4*4*8 = 128
    B, C, H, W = 2, 4, 4, 8
    input_dims = C * H * W          # 128
    fc1_dims = 256                  # (module default 800, scaled down)
    fc2_dims = 128                  # (module default 600, scaled down)
    n_actions = 8                   # padded to 128 lanes inside the kernel

    key = jax.random.PRNGKey(0)
    k_state, k1, k2, k3, k_big = jax.random.split(key, 5)

    state = jax.random.normal(k_state, (B, C, H, W), jnp.float32)
    w1, b1 = init_linear(k1, input_dims, fc1_dims)
    w2, b2 = init_linear(k2, fc1_dims, fc2_dims)
    w3, b3 = init_linear(k3, fc2_dims, n_actions)

    # One-time parameter prep (pad + bf16 cast), reused for every forward.
    params = prepare_actor_params(w1, b1, w2, b2, w3, b3)

    # Small-batch inference (B=2 padded to a 16-row tile, grid=(1,)).
    out = jax.block_until_ready(actor_forward(state, params))
    assert out.shape == (B, n_actions)
    assert jnp.allclose(out, ref_forward_bf16(state, w1, b1, w2, b2, w3, b3),
                        atol=2e-2, rtol=2e-2)
    assert jnp.allclose(out, ref_forward_f32(state, w1, b1, w2, b2, w3, b3),
                        atol=5e-2, rtol=5e-2)

    # Larger batch exercising the grid: B=600 -> TM=304, grid=(2,) (even split
    # across v7x's two TensorCores; weights VMEM-resident across both tiles).
    Bb = 600
    state_big = jax.random.normal(k_big, (Bb, C, H, W), jnp.float32)
    out_big = jax.block_until_ready(actor_forward(state_big, params))
    assert out_big.shape == (Bb, n_actions)
    assert jnp.allclose(out_big,
                        ref_forward_bf16(state_big, w1, b1, w2, b2, w3, b3),
                        atol=2e-2, rtol=2e-2)
    assert jnp.allclose(out_big,
                        ref_forward_f32(state_big, w1, b1, w2, b2, w3, b3),
                        atol=5e-2, rtol=5e-2)

    print("KERNEL_OK")
</pallas_src>

<mosaic_0001>
module attributes {stable_mosaic.version = 11 : i64} {
  func.func @actor_kernel(%arg0: i32, %arg1: memref<16x128xf32, #tpu.memory_space<vmem>>, %arg2: memref<128x256xbf16, #tpu.memory_space<vmem>>, %arg3: memref<1x256xf32, #tpu.memory_space<vmem>>, %arg4: memref<256x128xbf16, #tpu.memory_space<vmem>>, %arg5: memref<1x128xf32, #tpu.memory_space<vmem>>, %arg6: memref<128x128xbf16, #tpu.memory_space<vmem>>, %arg7: memref<1x128xf32, #tpu.memory_space<vmem>>, %arg8: memref<16x128xbf16, #tpu.memory_space<vmem>>) attributes {dimension_semantics = [#tpu.dimension_semantics<parallel>], iteration_bounds = array<i64: 1>, scalar_prefetch = 0 : i64, scratch_operands = 0 : i64, tpu.core_type = #tpu.core_type<tc>, window_params = [{transform_indices = @transform_0, window_bounds = array<i64: 16, 128>}, {pipeline_mode = #tpu.pipeline_mode<synchronous>, transform_indices = @transform_1, window_bounds = array<i64: 128, 256>}, {pipeline_mode = #tpu.pipeline_mode<synchronous>, transform_indices = @transform_2, window_bounds = array<i64: 1, 256>}, {pipeline_mode = #tpu.pipeline_mode<synchronous>, transform_indices = @transform_3, window_bounds = array<i64: 256, 128>}, {pipeline_mode = #tpu.pipeline_mode<synchronous>, transform_indices = @transform_4, window_bounds = array<i64: 1, 128>}, {pipeline_mode = #tpu.pipeline_mode<synchronous>, transform_indices = @transform_5, window_bounds = array<i64: 128, 128>}, {pipeline_mode = #tpu.pipeline_mode<synchronous>, transform_indices = @transform_6, window_bounds = array<i64: 1, 128>}, {transform_indices = @transform_7, window_bounds = array<i64: 16, 128>}]} {
    %c0 = arith.constant 0 : index
    %c0_0 = arith.constant 0 : index
    %0 = vector.load %arg1[%c0, %c0_0] : memref<16x128xf32, #tpu.memory_space<vmem>>, vector<16x128xf32>
    %1 = arith.truncf %0 : vector<16x128xf32> to vector<16x128xbf16>
    %c0_1 = arith.constant 0 : index
    %c0_2 = arith.constant 0 : index
    %2 = vector.load %arg2[%c0_1, %c0_2] : memref<128x256xbf16, #tpu.memory_space<vmem>>, vector<128x256xbf16>
    %cst = arith.constant dense<0.000000e+00> : vector<16x256xf32>
    %3 = tpu.matmul %1, %2, %cst {dimension_numbers = #tpu.dot_dimension_numbers<[1], [0], [0], [1], [0, 0, 1, 1], [], []>} : vector<16x128xbf16>, vector<128x256xbf16>, vector<16x256xf32> -> vector<16x256xf32>
    %c0_3 = arith.constant 0 : index
    %c0_4 = arith.constant 0 : index
    %4 = vector.load %arg3[%c0_3, %c0_4] : memref<1x256xf32, #tpu.memory_space<vmem>>, vector<1x256xf32>
    %5 = vector.broadcast %4 : vector<1x256xf32> to vector<16x256xf32>
    %6 = arith.addf %3, %5 : vector<16x256xf32>
    %cst_5 = arith.constant 0.000000e+00 : f32
    %7 = vector.broadcast %cst_5 : f32 to vector<16x256xf32>
    %8 = arith.maximumf %6, %7 : vector<16x256xf32>
    %9 = arith.truncf %8 : vector<16x256xf32> to vector<16x256xbf16>
    %c0_6 = arith.constant 0 : index
    %c0_7 = arith.constant 0 : index
    %10 = vector.load %arg4[%c0_6, %c0_7] : memref<256x128xbf16, #tpu.memory_space<vmem>>, vector<256x128xbf16>
    %cst_8 = arith.constant dense<0.000000e+00> : vector<16x128xf32>
    %11 = tpu.matmul %9, %10, %cst_8 {dimension_numbers = #tpu.dot_dimension_numbers<[1], [0], [0], [1], [0, 0, 1, 1], [], []>} : vector<16x256xbf16>, vector<256x128xbf16>, vector<16x128xf32> -> vector<16x128xf32>
    %c0_9 = arith.constant 0 : index
    %c0_10 = arith.constant 0 : index
    %12 = vector.load %arg5[%c0_9, %c0_10] : memref<1x128xf32, #tpu.memory_space<vmem>>, vector<1x128xf32>
    %13 = vector.broadcast %12 : vector<1x128xf32> to vector<16x128xf32>
    %14 = arith.addf %11, %13 : vector<16x128xf32>
    %cst_11 = arith.constant 0.000000e+00 : f32
    %15 = vector.broadcast %cst_11 : f32 to vector<16x128xf32>
    %16 = arith.maximumf %14, %15 : vector<16x128xf32>
    %17 = arith.truncf %16 : vector<16x128xf32> to vector<16x128xbf16>
    %c0_12 = arith.constant 0 : index
    %c0_13 = arith.constant 0 : index
    %18 = vector.load %arg6[%c0_12, %c0_13] : memref<128x128xbf16, #tpu.memory_space<vmem>>, vector<128x128xbf16>
    %cst_14 = arith.constant dense<0.000000e+00> : vector<16x128xf32>
    %19 = tpu.matmul %17, %18, %cst_14 {dimension_numbers = #tpu.dot_dimension_numbers<[1], [0], [0], [1], [0, 0, 1, 1], [], []>} : vector<16x128xbf16>, vector<128x128xbf16>, vector<16x128xf32> -> vector<16x128xf32>
    %c0_15 = arith.constant 0 : index
    %c0_16 = arith.constant 0 : index
    %20 = vector.load %arg7[%c0_15, %c0_16] : memref<1x128xf32, #tpu.memory_space<vmem>>, vector<1x128xf32>
    %21 = vector.broadcast %20 : vector<1x128xf32> to vector<16x128xf32>
    %22 = arith.addf %19, %21 : vector<16x128xf32>
    %23 = math.tanh %22 : vector<16x128xf32>
    %24 = arith.truncf %23 : vector<16x128xf32> to vector<16x128xbf16>
    %c0_17 = arith.constant 0 : index
    %c0_18 = arith.constant 0 : index
    %25 = vector.load %arg8[%c0_17, %c0_18] : memref<16x128xbf16, #tpu.memory_space<vmem>>, vector<16x128xbf16>
    tpu.vector_store %arg8[%c0_17, %c0_18], %24 {strides = array<i32>} : memref<16x128xbf16, #tpu.memory_space<vmem>>, vector<16x128xbf16>,
    return
  }
  func.func @transform_0(%arg0: i32) -> (i32, i32) {
    %c0_i32 = arith.constant 0 : i32
    %c0_i32_0 = arith.constant 0 : i32
    return %arg0, %c0_i32 : i32, i32
  }
  func.func @transform_1(%arg0: i32) -> (i32, i32) {
    %c0_i32 = arith.constant 0 : i32
    %c0_i32_0 = arith.constant 0 : i32
    %c0_i32_1 = arith.constant 0 : i32
    return %c0_i32, %c0_i32_0 : i32, i32
  }
  func.func @transform_2(%arg0: i32) -> (i32, i32) {
    %c0_i32 = arith.constant 0 : i32
    %c0_i32_0 = arith.constant 0 : i32
    %c0_i32_1 = arith.constant 0 : i32
    return %c0_i32, %c0_i32_0 : i32, i32
  }
  func.func @transform_3(%arg0: i32) -> (i32, i32) {
    %c0_i32 = arith.constant 0 : i32
    %c0_i32_0 = arith.constant 0 : i32
    %c0_i32_1 = arith.constant 0 : i32
    return %c0_i32, %c0_i32_0 : i32, i32
  }
  func.func @transform_4(%arg0: i32) -> (i32, i32) {
    %c0_i32 = arith.constant 0 : i32
    %c0_i32_0 = arith.constant 0 : i32
    %c0_i32_1 = arith.constant 0 : i32
    return %c0_i32, %c0_i32_0 : i32, i32
  }
  func.func @transform_5(%arg0: i32) -> (i32, i32) {
    %c0_i32 = arith.constant 0 : i32
    %c0_i32_0 = arith.constant 0 : i32
    %c0_i32_1 = arith.constant 0 : i32
    return %c0_i32, %c0_i32_0 : i32, i32
  }
  func.func @transform_6(%arg0: i32) -> (i32, i32) {
    %c0_i32 = arith.constant 0 : i32
    %c0_i32_0 = arith.constant 0 : i32
    %c0_i32_1 = arith.constant 0 : i32
    return %c0_i32, %c0_i32_0 : i32, i32
  }
  func.func @transform_7(%arg0: i32) -> (i32, i32) {
    %c0_i32 = arith.constant 0 : i32
    %c0_i32_0 = arith.constant 0 : i32
    return %arg0, %c0_i32 : i32, i32
  }
}

</mosaic_0001>

<bundles_post_ra>
// kernel: tpu_custom_call.1
= control target key start
LH: loop header
LB: loop body
LE: loop exit
PB: predicated region body
PF: predicated region fallthrough
CT: control target
= control target key end

     0   :  { %12 = vsyncpa [#allocation3], 0  ;;  %s986_s0 = inlined_call_operand.hbm [shape: f32[16,128], index: 0, kind: input, shape index: {}]   ;;  %s987_s1 = inlined_call_operand.hbm [shape: bf16[128,256], index: 1, kind: input, shape index: {}]   ;;  %s988_s2 = inlined_call_operand.vmem [shape: f32[1,256], index: 2, kind: input, shape index: {}]   ;;  %s989_s3 = inlined_call_operand.hbm [shape: bf16[256,128], index: 3, kind: input, shape index: {}]   ;;  %s990_s4 = inlined_call_operand.vmem [shape: f32[1,128], index: 4, kind: input, shape index: {}]   ;;  %s991_s5 = inlined_call_operand.hbm [shape: bf16[128,128], index: 5, kind: input, shape index: {}]   ;;  %s992_s6 = inlined_call_operand.vmem [shape: f32[1,128], index: 6, kind: input, shape index: {}]   ;;  %s993_s7 = inlined_call_operand.hbm [shape: bf16[16,128], index: 7, kind: output, shape index: {}]  }
   0x1   :  { %13 = vsyncpa [#allocation6], 0 }
   0x2   :  { %14 = vsyncpa [#allocation9], 0 }
   0x3   :  { %15 = vsyncpa [#allocation4], 0  ;;  %s849_s24 = smov [#allocation5]   ;;  %s850_s26 = smov [#allocation2]  }
   0x4   :  { %s33_s25 = sshll.u32 %s849_s24, 4  ;;  %s21_s27 = sshll.u32 %s850_s26, 4  ;;  %s34_s25 = int_to_ptr.vmem [resolvable:$true] %s33_s25  ;;  %s901_s27 = int_to_ptr.vmem [resolvable:$true] %s21_s27 }
   0x5   :  { %s731_s30 = scalar_lea.hbm %s987_s1, 2048 }
   0x6   :  { %p732_p0 = scmp.ne.s32.totalorder %s987_s1, %s731_s30  ;;  %p735_p1 = scmp.lt.u32.totalorder %s731_s30, %s987_s1 }
   0x8   :  { %p737_p2 = pnand %p735_p1, %p732_p0 }
   0xa   :  { %740 = shalt.err (!%p737_p2)
}
   0xb   :  { %s741_s12 = scalar_lea.vmem %s34_s25, 2048  ;;  %p746_p4 = scmp.lt.s32.totalorder %s34_s25, %s34_s25 }
   0xc   :  { %p742_p3 = scmp.ne.s32.totalorder %s34_s25, %s741_s12  ;;  %p747_p5 = scmp.lt.s32.totalorder %s741_s12, %s741_s12 }
   0xe   :  { %p748_p6 = por %p747_p5, %p746_p4 }
  0x10   :  { %p749_p7 = pnand %p748_p6, %p742_p3 }
  0x12   :  { %752 = shalt.err (!%p749_p7)
}
  0x13   :  { %s851_s13 = smov 128   ;;  %s852_s14 = smov 8  }
  0x14   :  { %39 = dma.hbm_to_vmem [thread:$0]  %s987_s1, 2048, %s34_s25, [#allocation6], %s851_s13, %s851_s13, %s852_s14  }
  0x15   :  { %s753_s19 = scalar_lea.hbm %s986_s0, 256 }
  0x16   :  { %p754_p8 = scmp.ne.s32.totalorder %s986_s0, %s753_s19  ;;  %p757_p9 = scmp.lt.u32.totalorder %s753_s19, %s986_s0 }
  0x18   :  { %p759_p10 = pnand %p757_p9, %p754_p8 }
  0x1a   :  { %762 = shalt.err (!%p759_p10)
}
  0x1b   :  { %s763_s24 = scalar_lea.vmem %s901_s27, 256  ;;  %p768_p12 = scmp.lt.s32.totalorder %s901_s27, %s901_s27 }
  0x1c   :  { %p764_p11 = scmp.ne.s32.totalorder %s901_s27, %s763_s24  ;;  %p769_p13 = scmp.lt.s32.totalorder %s763_s24, %s763_s24 }
  0x1e   :  { %p770_p0 = por %p769_p13, %p768_p12 }
  0x20   :  { %p771_p1 = pnand %p770_p0, %p764_p11 }
  0x22   :  { %774 = shalt.err (!%p771_p1)
}
  0x23   :  { %27 = dma.hbm_to_vmem [thread:$0]  %s986_s0, 256, %s901_s27, [#allocation3], %s851_s13, %s851_s13, %s852_s14  }
  0x24   :  { %s853_s26 = smov [#allocation7]   ;;  %s775_s8 = scalar_lea.hbm %s989_s3, 2048 }
  0x25   :  { %s47_s28 = sshll.u32 %s853_s26, 4  ;;  %p776_p2 = scmp.ne.s32.totalorder %s989_s3, %s775_s8  ;;  %s48_s28 = int_to_ptr.vmem [resolvable:$true] %s47_s28 }
  0x26   :  { %p779_p3 = scmp.lt.u32.totalorder %s775_s8, %s989_s3 }
  0x28   :  { %p781_p4 = pnand %p779_p3, %p776_p2 }
  0x2a   :  { %784 = shalt.err (!%p781_p4)
}
  0x2b   :  { %s785_s15 = scalar_lea.vmem %s48_s28, 2048  ;;  %p790_p6 = scmp.lt.s32.totalorder %s48_s28, %s48_s28 }
  0x2c   :  { %p786_p5 = scmp.ne.s32.totalorder %s48_s28, %s785_s15  ;;  %p791_p7 = scmp.lt.s32.totalorder %s785_s15, %s785_s15 }
  0x2e   :  { %p792_p8 = por %p791_p7, %p790_p6 }
  0x30   :  { %p793_p9 = pnand %p792_p8, %p786_p5 }
  0x32   :  { %796 = shalt.err (!%p793_p9)
}
  0x33   :  { %s854_s0 = smov 64   ;;  %s855_s27 = smov 4  }
  0x34   :  { %53 = dma.hbm_to_vmem [thread:$0]  %s989_s3, 2048, %s48_s28, [#allocation6], %s854_s0, %s854_s0, %s855_s27  }
  0x35   :  { %s856_s16 = smov [#allocation8]   ;;  %s797_s20 = scalar_lea.hbm %s991_s5, 1024 }
  0x36   :  { %s61_s17 = sshll.u32 %s856_s16, 4  ;;  %p798_p10 = scmp.ne.s32.totalorder %s991_s5, %s797_s20  ;;  %s62_s17 = int_to_ptr.vmem [resolvable:$true] %s61_s17 }
  0x37   :  { %p801_p11 = scmp.lt.u32.totalorder %s797_s20, %s991_s5 }
  0x39   :  { %p803_p12 = pnand %p801_p11, %p798_p10 }
  0x3b   :  { %806 = shalt.err (!%p803_p12)
}
  0x3c   :  { %s807_s1 = scalar_lea.vmem %s62_s17, 1024  ;;  %p812_p0 = scmp.lt.s32.totalorder %s62_s17, %s62_s17 }
  0x3d   :  { %p808_p13 = scmp.ne.s32.totalorder %s62_s17, %s807_s1  ;;  %p813_p1 = scmp.lt.s32.totalorder %s807_s1, %s807_s1 }
  0x3f   :  { %p814_p2 = por %p813_p1, %p812_p0 }
  0x41   :  { %p815_p3 = pnand %p814_p2, %p808_p13 }
  0x43   :  { %818 = shalt.err (!%p815_p3)
}
  0x44   :  { %67 = dma.hbm_to_vmem [thread:$0]  %s991_s5, 1024, %s62_s17, [#allocation9], %s854_s0, %s854_s0, %s855_s27  }
  0x45   :  { %841 = dma.done.wait [#allocation3], 256  }
  0x46   :  { %842 = vsyncadd [#allocation3], 4294967040 }
  0x47   :  { %843 = dma.done.wait [#allocation6], 4096  }
  0x48   :  { %844 = vsyncadd [#allocation6], 4294963200 }
  0x49   :  { %845 = dma.done.wait [#allocation9], 1024  }
  0x4a   :  { %846 = vsyncadd [#allocation9], 4294966272  ;;  %v857_v0 = vmov 0   ;;  %v679_v1 = vld [vmem:[#allocation5 + $0x4] ss:$8 sps:$4 sm:$0xff]   ;;  %v707_v16 = vld [vmem:[#allocation7 + $0x50] sm:$0xff]   ;;  %v104_v42 = vlaneseq }
  0x4b   :  { %226 = vmatprep.mubr.bf16.mxu0 %v857_v0  ;;  %v681_v2 = vld [vmem:[#allocation5] ss:$8 sps:$4 sm:$0xff]   ;;  %194 = vmatprep.subr.bf16.mxu0 %v679_v1  ;;  %v682_v3 = vld [vmem:[#allocation5 + $0x14] ss:$8 sps:$4 sm:$0xff]   ;;  %v684_v4 = vld [vmem:[#allocation5 + $0x10] ss:$8 sps:$4 sm:$0xff]  }
  0x4c   :  { %195 = vmatpush1.bf16.msra.mxu0 %v681_v2  ;;  %v685_v5 = vld [vmem:[#allocation5 + $0x24] ss:$8 sps:$4 sm:$0xff]   ;;  %v687_v6 = vld [vmem:[#allocation5 + $0x20] ss:$8 sps:$4 sm:$0xff]   ;;  %v688_v7 = vld [vmem:[#allocation5 + $0x34] ss:$8 sps:$4 sm:$0xff]  }
  0x4d   :  { %196 = vmatprep.subr.bf16.mxu0 %v682_v3  ;;  %v690_v8 = vld [vmem:[#allocation5 + $0x30] ss:$8 sps:$4 sm:$0xff]   ;;  %v691_v9 = vld [vmem:[#allocation5 + $0x44] ss:$8 sps:$4 sm:$0xff]   ;;  %v693_v11 = vld [vmem:[#allocation5 + $0x40] ss:$8 sps:$4 sm:$0xff]  }
  0x4e   :  { %v703_v10 = vld [vmem:[#allocation7 + $0x40] sm:$0xff]   ;;  %v694_v13 = vld [vmem:[#allocation5 + $0x54] ss:$8 sps:$4 sm:$0xff]   ;;  %v705_v14 = vld [vmem:[#allocation7 + $0x48] sm:$0xff]   ;;  %v858_v37 = vmov 0.0   ;;  %v105_v43 = vshrl.u32 %v104_v42, 7 }
  0x4f   :  { %v704_v12 = vld [vmem:[#allocation7] sm:$0xff]   ;;  %616 = vmatprep.subr.bf16.mxu1 %v703_v10  ;;  %v706_v15 = vld [vmem:[#allocation7 + $0x8] sm:$0xff]   ;;  %v696_v17 = vld [vmem:[#allocation5 + $0x50] ss:$8 sps:$4 sm:$0xff]   ;;  %vm859_vm0 = vmmov 0  }
  0x50   :  { %197 = vmatpush1.bf16.msra.mxu0 %v684_v4  ;;  %617 = vmatpush3.bf16.msra.mxu1 %v704_v12  ;;  %v697_v18 = vld [vmem:[#allocation5 + $0x64] ss:$8 sps:$4 sm:$0xff]   ;;  %v708_v19 = vld [vmem:[#allocation7 + $0x10] sm:$0xff]   ;;  %v709_v20 = vld [vmem:[#allocation7 + $0x58] sm:$0xff]   ;;  %v106_v44 = vsub.s32 0, %v105_v43  ;;  %v110_v46 = vsub.s32 1, %v105_v43 }
  0x51   :  { %198 = vmatprep.subr.bf16.mxu0 %v685_v5  ;;  %618 = vmatprep.subr.bf16.mxu1 %v705_v14  ;;  %v699_v21 = vld [vmem:[#allocation5 + $0x60] ss:$8 sps:$4 sm:$0xff]   ;;  %v700_v22 = vld [vmem:[#allocation5 + $0x74] ss:$8 sps:$4 sm:$0xff]   ;;  %v702_v25 = vld [vmem:[#allocation5 + $0x70] ss:$8 sps:$4 sm:$0xff]  }
  0x52   :  { %v710_v23 = vld [vmem:[#allocation7 + $0x18] sm:$0xff]   ;;  %v711_v24 = vld [vmem:[#allocation7 + $0x60] sm:$0xff]   ;;  %v83_v26 = vld [vmem:[#allocation2] sm:$0xff] }
  0x53   :  { %v84_v27 = vld [vmem:[#allocation2 + $0x8] sm:$0xff]  ;;  %v712_v28 = vld [vmem:[#allocation7 + $0x20] sm:$0xff]   ;;  %v713_v29 = vld [vmem:[#allocation7 + $0x68] sm:$0xff]  }
  0x54   :  { %199 = vmatpush1.bf16.msra.mxu0 %v687_v6  ;;  %619 = vmatpush3.bf16.msra.mxu1 %v706_v15  ;;  %v85_v30 = vpack.c.bf16 %v84_v27, %v83_v26  ;;  %v714_v31 = vld [vmem:[#allocation7 + $0x28] sm:$0xff]   ;;  %v715_v32 = vld [vmem:[#allocation7 + $0x70] sm:$0xff]   ;;  %v717_v34 = vld [vmem:[#allocation7 + $0x78] sm:$0xff]  }
  0x55   :  { %200 = vmatprep.subr.bf16.mxu0 %v688_v7  ;;  %620 = vmatprep.subr.bf16.mxu1 %v707_v16  ;;  %v716_v33 = vld [vmem:[#allocation7 + $0x30] sm:$0xff]   ;;  %v718_v35 = vld [vmem:[#allocation7 + $0x38] sm:$0xff]   ;;  %v719_v36 = vld [vmem:[#allocation8] sm:$0xff]  }
  0x56   :  { %v720_v38 = vld [vmem:[#allocation8 + $0x8] sm:$0xff]   ;;  %v721_v39 = vld [vmem:[#allocation8 + $0x10] sm:$0xff]   ;;  %v722_v40 = vld [vmem:[#allocation8 + $0x18] sm:$0xff]  }
  0x57   :  { %v723_v41 = vld [vmem:[#allocation8 + $0x20] sm:$0xff]   ;;  %v102_v45 = vld [vmem:[%s988_s2] sm:$0x3]  ;;  %v724_v63 = vld [vmem:[#allocation8 + $0x28] sm:$0xff]  }
  0x58   :  { %201 = vmatpush1.bf16.msra.mxu0 %v690_v8  ;;  %621 = vmatpush3.bf16.msra.mxu1 %v708_v19  ;;  %v107_v47 = vrot.slane %v102_v45, %v106_v44  ;;  %v111_v48 = vrot.slane %v102_v45, %v110_v46  ;;  %v725_v0 = vld [vmem:[#allocation8 + $0x30] sm:$0xff]   ;;  %v726_v1 = vld [vmem:[#allocation8 + $0x38] sm:$0xff]  }
  0x59   :  { %202 = vmatprep.subr.bf16.mxu0 %v691_v9  ;;  %622 = vmatprep.subr.bf16.mxu1 %v709_v20  ;;  %v581_v3 = vld [vmem:[%s990_s4] ss:$0 sm:$0xff]  ;;  %s860_s4 = smov [#allocation10]  }
  0x5a   :  { %v598_v14 = vld [vmem:[%s992_s6] ss:$0 sm:$0xff]  ;;  %s551_s8 = sshll.u32 %s860_s4, 4  ;;  %s552_s8 = int_to_ptr.vmem [resolvable:$true] %s551_s8 }
  0x5b   :  { %s819_s9 = scalar_lea.vmem %s552_s8, 128  ;;  %p824_p5 = scmp.lt.s32.totalorder %s552_s8, %s552_s8 }
  0x5c   :  { %203 = vmatpush1.bf16.msra.mxu0 %v693_v11  ;;  %623 = vmatpush3.bf16.msra.mxu1 %v710_v23  ;;  %p820_p4 = scmp.ne.s32.totalorder %s552_s8, %s819_s9  ;;  %p825_p6 = scmp.lt.s32.totalorder %s819_s9, %s819_s9 }
  0x5d   :  { %204 = vmatprep.subr.bf16.mxu0 %v694_v13  ;;  %624 = vmatprep.subr.bf16.mxu1 %v711_v24 }
  0x5e   :  { %p826_p7 = por %p825_p6, %p824_p5 }
  0x60   :  { %205 = vmatpush1.bf16.msra.mxu0 %v696_v17  ;;  %625 = vmatpush3.bf16.msra.mxu1 %v712_v28  ;;  %p827_p8 = pnand %p826_p7, %p820_p4 }
  0x61   :  { %206 = vmatprep.subr.bf16.mxu0 %v697_v18  ;;  %626 = vmatprep.subr.bf16.mxu1 %v713_v29 }
  0x64   :  { %207 = vmatpush1.bf16.msra.mxu0 %v699_v21  ;;  %627 = vmatpush3.bf16.msra.mxu1 %v714_v31 }
  0x65   :  { %208 = vmatprep.subr.bf16.mxu0 %v700_v22  ;;  %628 = vmatprep.subr.bf16.mxu1 %v715_v32 }
  0x68   :  { %209 = vmatpush1.bf16.msra.mxu0 %v702_v25  ;;  %629 = vmatpush3.bf16.msra.mxu1 %v716_v33 }
  0x69   :  { %630 = vmatprep.subr.bf16.mxu1 %v717_v34  ;;  %647 = vmatprep.subr.bf16.mxu0 %v858_v37 }
  0x6b   :  { %227 = vmatmul.mubr.bf16.vlgmr.msra.gmra.mrb[0].mxu0 %v85_v30 }
  0x6c   :  { %631 = vmatpush3.bf16.msra.mxu1 %v718_v35  ;;  %648 = vmatpush3.bf16.msra.mxu0 %v719_v36 }
  0x6d   :  { %649 = vmatprep.subr.bf16.mxu0 %v858_v37  ;;  %663 = vmatprep.mubr.msk.bf16.mxu0 %vm859_vm0, %v858_v37 }
  0x70   :  { %650 = vmatpush3.bf16.msra.mxu0 %v720_v38 }
  0x71   :  { %651 = vmatprep.subr.bf16.mxu0 %v858_v37 }
  0x74   :  { %652 = vmatpush3.bf16.msra.mxu0 %v721_v39 }
  0x75   :  { %653 = vmatprep.subr.bf16.mxu0 %v858_v37 }
  0x78   :  { %654 = vmatpush3.bf16.msra.mxu0 %v722_v40 }
  0x79   :  { %655 = vmatprep.subr.bf16.mxu0 %v858_v37 }
  0x7c   :  { %656 = vmatpush3.bf16.msra.mxu0 %v723_v41 }
  0x7d   :  { %657 = vmatprep.subr.bf16.mxu0 %v858_v37 }
  0x80   :  { %658 = vmatpush3.bf16.msra.mxu0 %v724_v63 }
  0x81   :  { %659 = vmatprep.subr.bf16.mxu0 %v858_v37 }
  0x84   :  { %660 = vmatpush3.bf16.msra.mxu0 %v725_v0 }
  0x85   :  { %661 = vmatprep.subr.bf16.mxu0 %v858_v37 }
  0x88   :  { %662 = vmatpush3.bf16.msra.mxu0 %v726_v1 }
 0x13e   :  { %v228_v49 = vpop.f32.mrb[0].mxu0 }
 0x13f   :  { %v229_v50 = vadd.f32 %v228_v49, %v107_v47  ;;  %v230_v51 = vpop.f32.mrb[1].mxu0 }
 0x140   :  { %v231_v52 = vadd.f32 %v230_v51, %v111_v48  ;;  %v232_v53 = vpop.f32.mrb[2].mxu0 }
 0x141   :  { %v233_v54 = vadd.f32 %v232_v53, %v107_v47  ;;  %v234_v55 = vpop.f32.mrb[3].mxu0  ;;  %v237_v57 = vmax.f32 %v229_v50, 0.0 }
 0x142   :  { %v235_v56 = vadd.f32 %v234_v55, %v111_v48  ;;  %v238_v59 = vmax.f32 %v231_v52, 0.0 }
 0x143   :  { %v239_v58 = vmax.f32 %v233_v54, 0.0 }
 0x144   :  { %v240_v60 = vmax.f32 %v235_v56, 0.0 }
 0x145   :  { %v241_v61 = vpack.c.bf16 %v239_v58, %v237_v57 }
 0x146   :  { %v242_v62 = vpack.c.bf16 %v240_v60, %v238_v59 }
 0x148   :  { %410 = vmatprep.mubr.bf16.mxu1 %v242_v62 }
 0x149   :  { %411 = vmatmul.mubr.bf16.vlgmr.msra.gmra.mrb[0].mxu1 %v241_v61 }
 0x21c   :  { %v632_v2 = vpop.f32.mrb[0].mxu1 }
 0x21d   :  { %v633_v4 = vpop.f32.mrb[1].mxu1 }
 0x21e   :  { %v634_v5 = vadd.f32 %v633_v4, %v632_v2  ;;  %v635_v6 = vpop.f32.mrb[2].mxu1 }
 0x21f   :  { %v636_v7 = vpop.f32.mrb[3].mxu1 }
 0x220   :  { %v413_v8 = vadd.f32 %v634_v5, %v581_v3  ;;  %v637_v9 = vadd.f32 %v636_v7, %v635_v6 }
 0x222   :  { %v416_v10 = vadd.f32 %v637_v9, %v581_v3  ;;  %v419_v11 = vmax.f32 %v413_v8, 0.0 }
 0x224   :  { %v420_v12 = vmax.f32 %v416_v10, 0.0 }
 0x226   :  { %v421_v13 = vpack.c.bf16 %v420_v12, %v419_v11 }
 0x228   :  { %664 = vmatmul.mubr.bf16.vlgmr.msra.gmra.mrb[4].mxu0 %v421_v13 }
 0x2fb   :  { %v527_v15 = vpop.f32.mrb[4].mxu0 }
 0x2fc   :  { %v528_v16 = vadd.f32 %v598_v14, %v527_v15  ;;  %v665_v17 = vpop.f32.mrb[5].mxu0 }
 0x2fd   :  { %v530_v18 = vpop.f32.mrb[6].mxu0 }
 0x2fe   :  { %v531_v19 = vadd.f32 %v598_v14, %v530_v18  ;;  %v666_v20 = vpop.f32.mrb[7].mxu0  ;;  %727 = vtanh.f32 %v528_v16 }
 0x300   :  { %729 = vtanh.f32 %v531_v19 }
 0x308   :  { %v728_v21 = vpop.eup %727 }
 0x30a   :  { %v730_v22 = vpop.eup %729 }
 0x30b   :  { %v614_v23 = vpack.c.bf16 %v730_v22, %v728_v21 }
 0x30d   :  { %615 = vst [vmem:[#allocation10] sm:$0xff] %v614_v23  }
 0x30e   :  { %830 = shalt.err (!%p827_p8)
}
 0x30f   :  { %s831_s11 = scalar_lea.hbm %s993_s7, 128 }
 0x310   :  { %p832_p9 = scmp.ne.s32.totalorder %s993_s7, %s831_s11  ;;  %p835_p10 = scmp.lt.u32.totalorder %s831_s11, %s993_s7 }
 0x312   :  { %p837_p11 = pnand %p835_p10, %p832_p9 }
 0x314   :  { %840 = shalt.err (!%p837_p11)
}
 0x315   :  { %557 = dma.vmem_to_hbm [thread:$0]  %s552_s8, 128, %s993_s7, [#allocation4], %s854_s0, %s854_s0, %s855_s27  }
 0x316   :  { %847 = dma.done.wait [#allocation4], 128  }
 0x317   :  { %848 = vsyncadd [#allocation4], 4294967168 }
 0x318   :  { %561 = vsyncpa [#allocation3], 1 }
 0x319   :  { %562 = vsyncpa [#allocation6], 1 }
 0x31a   :  { %563 = vsyncpa [#allocation9], 1 }
 0x31b   :  { %564 = vsyncpa [#allocation4], 1 }

</bundles_post_ra>
